<compile_context>
chip_gen: v5e
topology: v5e:2x2
jax: 0.10.0
libtpu: 0.0.40
codegen_flags: <defaults>
</compile_context>

<pallas_src>
import jax
import jax.numpy as jnp
from jax import lax
from jax.experimental import pallas as pl
from jax.experimental.pallas import tpu as pltpu

IN_F = 22          # BatchNorm1d / fc1 input features
H1 = 80            # fc1 output features
H2 = 80            # fc2 output features
OUT_F = 1          # fc3 output features
BN_EPS = 1e-5

HP = 128           # hidden dims padded to one full lane group
TM_MAX = 2048      # max rows per grid step (multiple of 128; ~180 KiB of x per buffer)
NSUB = 8           # sub-chunks per tile == sublane rows of the dense output block


def net_kernel(x_ref, w1_ref, w2_ref, slab_ref, out_ref):
    # x_ref: (TM, 22)  w1_ref: (22, 128)  w2_ref: (128, 128)
    # slab_ref: (8, 128) rows = [b1_folded, b2, w3_row, b3_bcast, 0...]
    # out_ref: (8, TM//8)  -- sub-chunk c writes sublane row c (lane-dense, unmasked)
    chunk = out_ref.shape[1]                    # rows per sub-chunk = TM // 8
    slab = slab_ref[...]
    b1 = slab[0:1, :]                           # (1, 128) folded fc1 bias
    b2 = slab[1:2, :]                           # (1, 128) fc2 bias
    w3 = slab[2:3, :]                           # (1, 128) fc3 weight row (lanes >= 80 zero)
    b3 = slab[3:4, 0:1]                         # (1, 1)   fc3 bias

    def body(c, carry):
        x = x_ref[pl.ds(c * chunk, chunk), :]                                   # (chunk, 22)
        # fc1 (BN pre-folded) + sigmoid; dropout d1 = identity in eval.
        z1 = jnp.dot(x, w1_ref[...], preferred_element_type=jnp.float32) + b1   # (chunk, 128)
        h1 = 0.5 * jnp.tanh(0.5 * z1) + 0.5                                     # == sigmoid(z1)
        # fc2 + sigmoid.  Zero pad rows/cols of w2 annihilate the padded lanes.
        z2 = jnp.dot(h1, w2_ref[...], preferred_element_type=jnp.float32) + b2  # (chunk, 128)
        h2 = 0.5 * jnp.tanh(0.5 * z2) + 0.5                                     # == sigmoid(z2)
        # fc3 on VPU/XLU: lane-dense w3 row multiply + lane reduce; pad lanes are zero.
        y = jnp.sum(h2 * w3, axis=-1)[None, :] + b3                             # (1, chunk)
        out_ref[pl.ds(c, 1), :] = y
        return carry

    lax.fori_loop(0, NSUB, body, 0, unroll=True)


def net_forward(x, packed):
    """x: (N, 22) f32.  packed: (w1p, w2p, slab) from prepare_params.  Returns (N, 1)."""
    w1p, w2p, slab = packed
    N = x.shape[0]
    # Adaptive row tile: amortize per-step overhead, keep >=2 steps for v7x megacore,
    # avoid huge padded tiles for small batches.
    TM = max(128, min(TM_MAX, 128 * pl.cdiv(N, 2 * 128)))
    G = pl.cdiv(N, TM)
    Np = G * TM
    chunk = TM // NSUB                         # multiple of 16 (TM is a multiple of 128)
    xp = jnp.pad(x, ((0, Np - N), (0, 0)))     # padded rows are computed then sliced off

    out = pl.pallas_call(
        net_kernel,
        out_shape=jax.ShapeDtypeStruct((G * NSUB, chunk), jnp.float32),
        grid=(G,),
        in_specs=[
            pl.BlockSpec((TM, IN_F), lambda i: (i, 0)),     # row tile of x (full 22-wide)
            pl.BlockSpec((IN_F, HP), lambda i: (0, 0)),     # w1 (resident across grid)
            pl.BlockSpec((HP, HP), lambda i: (0, 0)),       # w2 (resident across grid)
            pl.BlockSpec((NSUB, HP), lambda i: (0, 0)),     # packed bias/w3 slab (one DMA)
        ],
        out_specs=pl.BlockSpec((NSUB, chunk), lambda i: (i, 0)),  # dense (8, TM//8) block
        compiler_params=pltpu.CompilerParams(dimension_semantics=("parallel",)),
    )(xp, w1p, w2p, slab)

    # (G*8, TM//8) row-major flatten == batch-row order.
    return out.reshape(Np, 1)[:N]


def make_params(key):
    """Deterministic synthetic parameters with the shapes implied by Net.__init__."""
    ks = jax.random.split(key, 10)
    gamma = 1.0 + 0.1 * jax.random.normal(ks[0], (1, IN_F), jnp.float32)
    beta = 0.1 * jax.random.normal(ks[1], (1, IN_F), jnp.float32)
    r_mean = 0.1 * jax.random.normal(ks[2], (1, IN_F), jnp.float32)
    r_var = jnp.abs(1.0 + 0.1 * jax.random.normal(ks[3], (1, IN_F), jnp.float32))

    def linear(kw, kb, fan_in, fan_out):
        bound = 1.0 / jnp.sqrt(fan_in)
        w = jax.random.uniform(kw, (fan_in, fan_out), jnp.float32, -bound, bound)
        b = jax.random.uniform(kb, (1, fan_out), jnp.float32, -bound, bound)
        return w, b

    w1, b1 = linear(ks[4], ks[5], IN_F, H1)
    w2, b2 = linear(ks[6], ks[7], H1, H2)
    w3, b3 = linear(ks[8], ks[9], H2, OUT_F)
    return (gamma, beta, r_mean, r_var, w1, b1, w2, b2, w3, b3)


def prepare_params(params):
    """One-time (offline) prep: fold eval-mode BN into fc1, pad hidden dims to 128,
    and pack all small vectors into a single (8, 128) slab."""
    gamma, beta, r_mean, r_var, w1, b1, w2, b2, w3, b3 = params
    scale = gamma * jax.lax.rsqrt(r_var + BN_EPS)          # (1, 22)
    shift = beta - r_mean * scale                          # (1, 22)
    w1f = w1 * scale.reshape(IN_F, 1)                      # (22, 80): row i scaled by scale[i]
    b1f = b1 + shift @ w1                                  # (1, 80)

    w1p = jnp.zeros((IN_F, HP), jnp.float32).at[:, :H1].set(w1f)
    w2p = jnp.zeros((HP, HP), jnp.float32).at[:H1, :H2].set(w2)

    slab = jnp.zeros((NSUB, HP), jnp.float32)
    slab = slab.at[0, :H1].set(b1f[0])                     # folded fc1 bias
    slab = slab.at[1, :H2].set(b2[0])                      # fc2 bias
    slab = slab.at[2, :H2].set(w3[:, 0])                   # fc3 weight as a lane-dense row
    slab = slab.at[3, :].set(b3[0, 0])                     # fc3 bias broadcast
    return w1p, w2p, slab


def net_reference(x, params):
    """Pure-JAX reference using the UNfolded parameters (checks the BN fold too)."""
    gamma, beta, r_mean, r_var, w1, b1, w2, b2, w3, b3 = params
    xn = (x - r_mean) * jax.lax.rsqrt(r_var + BN_EPS) * gamma + beta
    h1 = jax.nn.sigmoid(xn @ w1 + b1)
    h2 = jax.nn.sigmoid(h1 @ w2 + b2)
    return h2 @ w3 + b3


if __name__ == "__main__":
    key = jax.random.PRNGKey(0)
    k_x1, k_x2, k_p = jax.random.split(key, 3)
    params = make_params(k_p)
    packed = prepare_params(params)

    # Small single-tile batch and a multi-tile batch (exercises G=2 + sub-chunk loop).
    for n, kx in ((8, k_x1), (300, k_x2)):
        x = jax.random.normal(kx, (n, IN_F), jnp.float32)
        out = jax.block_until_ready(net_forward(x, packed))
        ref = net_reference(x, params)
        assert out.shape == (n, OUT_F)
        assert jnp.allclose(out, ref, atol=2e-4, rtol=2e-4), f"mismatch vs reference (N={n})"
    print("KERNEL_OK")
</pallas_src>

<mosaic_0001>
module attributes {stable_mosaic.version = 11 : i64} {
  func.func @net_kernel(%arg0: i32, %arg1: memref<128x22xf32, #tpu.memory_space<vmem>>, %arg2: memref<22x128xf32, #tpu.memory_space<vmem>>, %arg3: memref<128x128xf32, #tpu.memory_space<vmem>>, %arg4: memref<8x128xf32, #tpu.memory_space<vmem>>, %arg5: memref<8x16xf32, #tpu.memory_space<vmem>>) attributes {dimension_semantics = [#tpu.dimension_semantics<parallel>], iteration_bounds = array<i64: 1>, scalar_prefetch = 0 : i64, scratch_operands = 0 : i64, tpu.core_type = #tpu.core_type<tc>, window_params = [{transform_indices = @transform_0, window_bounds = array<i64: 128, 22>}, {pipeline_mode = #tpu.pipeline_mode<synchronous>, transform_indices = @transform_1, window_bounds = array<i64: 22, 128>}, {pipeline_mode = #tpu.pipeline_mode<synchronous>, transform_indices = @transform_2, window_bounds = array<i64: 128, 128>}, {pipeline_mode = #tpu.pipeline_mode<synchronous>, transform_indices = @transform_3, window_bounds = array<i64: 8, 128>}, {transform_indices = @transform_4, window_bounds = array<i64: 8, 16>}]} {
    %c0 = arith.constant 0 : index
    %c0_0 = arith.constant 0 : index
    %0 = vector.load %arg4[%c0, %c0_0] : memref<8x128xf32, #tpu.memory_space<vmem>>, vector<8x128xf32>
    %1 = vector.extract_strided_slice %0 {offsets = [0, 0], sizes = [1, 128], strides = [1, 1]} : vector<8x128xf32> to vector<1x128xf32>
    %2 = vector.extract_strided_slice %0 {offsets = [1, 0], sizes = [1, 128], strides = [1, 1]} : vector<8x128xf32> to vector<1x128xf32>
    %3 = vector.extract_strided_slice %0 {offsets = [2, 0], sizes = [1, 128], strides = [1, 1]} : vector<8x128xf32> to vector<1x128xf32>
    %4 = vector.extract_strided_slice %0 {offsets = [3, 0], sizes = [1, 1], strides = [1, 1]} : vector<8x128xf32> to vector<1x1xf32>
    %c0_i32 = arith.constant 0 : i32
    %c16_i32 = arith.constant 16 : i32
    %5 = arith.muli %c0_i32, %c16_i32 : i32
    %6 = arith.index_cast %5 : i32 to index
    %c0_1 = arith.constant 0 : index
    %7 = vector.load %arg1[%6, %c0_1] : memref<128x22xf32, #tpu.memory_space<vmem>>, vector<16x22xf32>
    %c0_2 = arith.constant 0 : index
    %c0_3 = arith.constant 0 : index
    %8 = vector.load %arg2[%c0_2, %c0_3] : memref<22x128xf32, #tpu.memory_space<vmem>>, vector<22x128xf32>
    %cst = arith.constant dense<0.000000e+00> : vector<16x128xf32>
    %9 = tpu.matmul %7, %8, %cst {dimension_numbers = #tpu.dot_dimension_numbers<[1], [0], [0], [1], [0, 0, 1, 1], [], []>} : vector<16x22xf32>, vector<22x128xf32>, vector<16x128xf32> -> vector<16x128xf32>
    %10 = vector.broadcast %1 : vector<1x128xf32> to vector<16x128xf32>
    %11 = arith.addf %9, %10 : vector<16x128xf32>
    %cst_4 = arith.constant 5.000000e-01 : f32
    %12 = vector.broadcast %cst_4 : f32 to vector<16x128xf32>
    %13 = arith.mulf %12, %11 : vector<16x128xf32>
    %14 = math.tanh %13 : vector<16x128xf32>
    %cst_5 = arith.constant 5.000000e-01 : f32
    %15 = vector.broadcast %cst_5 : f32 to vector<16x128xf32>
    %16 = arith.mulf %15, %14 : vector<16x128xf32>
    %cst_6 = arith.constant 5.000000e-01 : f32
    %17 = vector.broadcast %cst_6 : f32 to vector<16x128xf32>
    %18 = arith.addf %16, %17 : vector<16x128xf32>
    %c0_7 = arith.constant 0 : index
    %c0_8 = arith.constant 0 : index
    %19 = vector.load %arg3[%c0_7, %c0_8] : memref<128x128xf32, #tpu.memory_space<vmem>>, vector<128x128xf32>
    %cst_9 = arith.constant dense<0.000000e+00> : vector<16x128xf32>
    %20 = tpu.matmul %18, %19, %cst_9 {dimension_numbers = #tpu.dot_dimension_numbers<[1], [0], [0], [1], [0, 0, 1, 1], [], []>} : vector<16x128xf32>, vector<128x128xf32>, vector<16x128xf32> -> vector<16x128xf32>
    %21 = vector.broadcast %2 : vector<1x128xf32> to vector<16x128xf32>
    %22 = arith.addf %20, %21 : vector<16x128xf32>
    %cst_10 = arith.constant 5.000000e-01 : f32
    %23 = vector.broadcast %cst_10 : f32 to vector<16x128xf32>
    %24 = arith.mulf %23, %22 : vector<16x128xf32>
    %25 = math.tanh %24 : vector<16x128xf32>
    %cst_11 = arith.constant 5.000000e-01 : f32
    %26 = vector.broadcast %cst_11 : f32 to vector<16x128xf32>
    %27 = arith.mulf %26, %25 : vector<16x128xf32>
    %cst_12 = arith.constant 5.000000e-01 : f32
    %28 = vector.broadcast %cst_12 : f32 to vector<16x128xf32>
    %29 = arith.addf %27, %28 : vector<16x128xf32>
    %30 = vector.broadcast %3 : vector<1x128xf32> to vector<16x128xf32>
    %31 = arith.mulf %29, %30 : vector<16x128xf32>
    %cst_13 = arith.constant dense<0.000000e+00> : vector<16xf32>
    %32 = vector.multi_reduction <add>, %31, %cst_13 [1] : vector<16x128xf32> to vector<16xf32>
    %33 = vector.shape_cast %32 : vector<16xf32> to vector<1x16xf32>
    %34 = vector.broadcast %4 : vector<1x1xf32> to vector<1x16xf32>
    %35 = arith.addf %33, %34 : vector<1x16xf32>
    %36 = arith.index_cast %c0_i32 : i32 to index
    %c0_14 = arith.constant 0 : index
    %37 = vector.load %arg5[%36, %c0_14] : memref<8x16xf32, #tpu.memory_space<vmem>>, vector<1x16xf32>
    tpu.vector_store %arg5[%36, %c0_14], %35 {strides = array<i32>} : memref<8x16xf32, #tpu.memory_space<vmem>>, vector<1x16xf32>,
    %c1_i32 = arith.constant 1 : i32
    %c16_i32_15 = arith.constant 16 : i32
    %38 = arith.muli %c1_i32, %c16_i32_15 : i32
    %39 = arith.index_cast %38 : i32 to index
    %c0_16 = arith.constant 0 : index
    %40 = vector.load %arg1[%39, %c0_16] : memref<128x22xf32, #tpu.memory_space<vmem>>, vector<16x22xf32>
    %c0_17 = arith.constant 0 : index
    %c0_18 = arith.constant 0 : index
    %41 = vector.load %arg2[%c0_17, %c0_18] : memref<22x128xf32, #tpu.memory_space<vmem>>, vector<22x128xf32>
    %cst_19 = arith.constant dense<0.000000e+00> : vector<16x128xf32>
    %42 = tpu.matmul %40, %41, %cst_19 {dimension_numbers = #tpu.dot_dimension_numbers<[1], [0], [0], [1], [0, 0, 1, 1], [], []>} : vector<16x22xf32>, vector<22x128xf32>, vector<16x128xf32> -> vector<16x128xf32>
    %43 = vector.broadcast %1 : vector<1x128xf32> to vector<16x128xf32>
    %44 = arith.addf %42, %43 : vector<16x128xf32>
    %cst_20 = arith.constant 5.000000e-01 : f32
    %45 = vector.broadcast %cst_20 : f32 to vector<16x128xf32>
    %46 = arith.mulf %45, %44 : vector<16x128xf32>
    %47 = math.tanh %46 : vector<16x128xf32>
    %cst_21 = arith.constant 5.000000e-01 : f32
    %48 = vector.broadcast %cst_21 : f32 to vector<16x128xf32>
    %49 = arith.mulf %48, %47 : vector<16x128xf32>
    %cst_22 = arith.constant 5.000000e-01 : f32
    %50 = vector.broadcast %cst_22 : f32 to vector<16x128xf32>
    %51 = arith.addf %49, %50 : vector<16x128xf32>
    %c0_23 = arith.constant 0 : index
    %c0_24 = arith.constant 0 : index
    %52 = vector.load %arg3[%c0_23, %c0_24] : memref<128x128xf32, #tpu.memory_space<vmem>>, vector<128x128xf32>
    %cst_25 = arith.constant dense<0.000000e+00> : vector<16x128xf32>
    %53 = tpu.matmul %51, %52, %cst_25 {dimension_numbers = #tpu.dot_dimension_numbers<[1], [0], [0], [1], [0, 0, 1, 1], [], []>} : vector<16x128xf32>, vector<128x128xf32>, vector<16x128xf32> -> vector<16x128xf32>
    %54 = vector.broadcast %2 : vector<1x128xf32> to vector<16x128xf32>
    %55 = arith.addf %53, %54 : vector<16x128xf32>
    %cst_26 = arith.constant 5.000000e-01 : f32
    %56 = vector.broadcast %cst_26 : f32 to vector<16x128xf32>
    %57 = arith.mulf %56, %55 : vector<16x128xf32>
    %58 = math.tanh %57 : vector<16x128xf32>
    %cst_27 = arith.constant 5.000000e-01 : f32
    %59 = vector.broadcast %cst_27 : f32 to vector<16x128xf32>
    %60 = arith.mulf %59, %58 : vector<16x128xf32>
    %cst_28 = arith.constant 5.000000e-01 : f32
    %61 = vector.broadcast %cst_28 : f32 to vector<16x128xf32>
    %62 = arith.addf %60, %61 : vector<16x128xf32>
    %63 = vector.broadcast %3 : vector<1x128xf32> to vector<16x128xf32>
    %64 = arith.mulf %62, %63 : vector<16x128xf32>
    %cst_29 = arith.constant dense<0.000000e+00> : vector<16xf32>
    %65 = vector.multi_reduction <add>, %64, %cst_29 [1] : vector<16x128xf32> to vector<16xf32>
    %66 = vector.shape_cast %65 : vector<16xf32> to vector<1x16xf32>
    %67 = vector.broadcast %4 : vector<1x1xf32> to vector<1x16xf32>
    %68 = arith.addf %66, %67 : vector<1x16xf32>
    %69 = arith.index_cast %c1_i32 : i32 to index
    %c0_30 = arith.constant 0 : index
    %70 = vector.load %arg5[%69, %c0_30] : memref<8x16xf32, #tpu.memory_space<vmem>>, vector<1x16xf32>
    tpu.vector_store %arg5[%69, %c0_30], %68 {strides = array<i32>} : memref<8x16xf32, #tpu.memory_space<vmem>>, vector<1x16xf32>,
    %c2_i32 = arith.constant 2 : i32
    %c16_i32_31 = arith.constant 16 : i32
    %71 = arith.muli %c2_i32, %c16_i32_31 : i32
    %72 = arith.index_cast %71 : i32 to index
    %c0_32 = arith.constant 0 : index
    %73 = vector.load %arg1[%72, %c0_32] : memref<128x22xf32, #tpu.memory_space<vmem>>, vector<16x22xf32>
    %c0_33 = arith.constant 0 : index
    %c0_34 = arith.constant 0 : index
    %74 = vector.load %arg2[%c0_33, %c0_34] : memref<22x128xf32, #tpu.memory_space<vmem>>, vector<22x128xf32>
    %cst_35 = arith.constant dense<0.000000e+00> : vector<16x128xf32>
    %75 = tpu.matmul %73, %74, %cst_35 {dimension_numbers = #tpu.dot_dimension_numbers<[1], [0], [0], [1], [0, 0, 1, 1], [], []>} : vector<16x22xf32>, vector<22x128xf32>, vector<16x128xf32> -> vector<16x128xf32>
    %76 = vector.broadcast %1 : vector<1x128xf32> to vector<16x128xf32>
    %77 = arith.addf %75, %76 : vector<16x128xf32>
    %cst_36 = arith.constant 5.000000e-01 : f32
    %78 = vector.broadcast %cst_36 : f32 to vector<16x128xf32>
    %79 = arith.mulf %78, %77 : vector<16x128xf32>
    %80 = math.tanh %79 : vector<16x128xf32>
    %cst_37 = arith.constant 5.000000e-01 : f32
    %81 = vector.broadcast %cst_37 : f32 to vector<16x128xf32>
    %82 = arith.mulf %81, %80 : vector<16x128xf32>
    %cst_38 = arith.constant 5.000000e-01 : f32
    %83 = vector.broadcast %cst_38 : f32 to vector<16x128xf32>
    %84 = arith.addf %82, %83 : vector<16x128xf32>
    %c0_39 = arith.constant 0 : index
    %c0_40 = arith.constant 0 : index
    %85 = vector.load %arg3[%c0_39, %c0_40] : memref<128x128xf32, #tpu.memory_space<vmem>>, vector<128x128xf32>
    %cst_41 = arith.constant dense<0.000000e+00> : vector<16x128xf32>
    %86 = tpu.matmul %84, %85, %cst_41 {dimension_numbers = #tpu.dot_dimension_numbers<[1], [0], [0], [1], [0, 0, 1, 1], [], []>} : vector<16x128xf32>, vector<128x128xf32>, vector<16x128xf32> -> vector<16x128xf32>
    %87 = vector.broadcast %2 : vector<1x128xf32> to vector<16x128xf32>
    %88 = arith.addf %86, %87 : vector<16x128xf32>
    %cst_42 = arith.constant 5.000000e-01 : f32
    %89 = vector.broadcast %cst_42 : f32 to vector<16x128xf32>
    %90 = arith.mulf %89, %88 : vector<16x128xf32>
    %91 = math.tanh %90 : vector<16x128xf32>
    %cst_43 = arith.constant 5.000000e-01 : f32
    %92 = vector.broadcast %cst_43 : f32 to vector<16x128xf32>
    %93 = arith.mulf %92, %91 : vector<16x128xf32>
    %cst_44 = arith.constant 5.000000e-01 : f32
    %94 = vector.broadcast %cst_44 : f32 to vector<16x128xf32>
    %95 = arith.addf %93, %94 : vector<16x128xf32>
    %96 = vector.broadcast %3 : vector<1x128xf32> to vector<16x128xf32>
    %97 = arith.mulf %95, %96 : vector<16x128xf32>
    %cst_45 = arith.constant dense<0.000000e+00> : vector<16xf32>
    %98 = vector.multi_reduction <add>, %97, %cst_45 [1] : vector<16x128xf32> to vector<16xf32>
    %99 = vector.shape_cast %98 : vector<16xf32> to vector<1x16xf32>
    %100 = vector.broadcast %4 : vector<1x1xf32> to vector<1x16xf32>
    %101 = arith.addf %99, %100 : vector<1x16xf32>
    %102 = arith.index_cast %c2_i32 : i32 to index
    %c0_46 = arith.constant 0 : index
    %103 = vector.load %arg5[%102, %c0_46] : memref<8x16xf32, #tpu.memory_space<vmem>>, vector<1x16xf32>
    tpu.vector_store %arg5[%102, %c0_46], %101 {strides = array<i32>} : memref<8x16xf32, #tpu.memory_space<vmem>>, vector<1x16xf32>,
    %c3_i32 = arith.constant 3 : i32
    %c16_i32_47 = arith.constant 16 : i32
    %104 = arith.muli %c3_i32, %c16_i32_47 : i32
    %105 = arith.index_cast %104 : i32 to index
    %c0_48 = arith.constant 0 : index
    %106 = vector.load %arg1[%105, %c0_48] : memref<128x22xf32, #tpu.memory_space<vmem>>, vector<16x22xf32>
    %c0_49 = arith.constant 0 : index
    %c0_50 = arith.constant 0 : index
    %107 = vector.load %arg2[%c0_49, %c0_50] : memref<22x128xf32, #tpu.memory_space<vmem>>, vector<22x128xf32>
    %cst_51 = arith.constant dense<0.000000e+00> : vector<16x128xf32>
    %108 = tpu.matmul %106, %107, %cst_51 {dimension_numbers = #tpu.dot_dimension_numbers<[1], [0], [0], [1], [0, 0, 1, 1], [], []>} : vector<16x22xf32>, vector<22x128xf32>, vector<16x128xf32> -> vector<16x128xf32>
    %109 = vector.broadcast %1 : vector<1x128xf32> to vector<16x128xf32>
    %110 = arith.addf %108, %109 : vector<16x128xf32>
    %cst_52 = arith.constant 5.000000e-01 : f32
    %111 = vector.broadcast %cst_52 : f32 to vector<16x128xf32>
    %112 = arith.mulf %111, %110 : vector<16x128xf32>
    %113 = math.tanh %112 : vector<16x128xf32>
    %cst_53 = arith.constant 5.000000e-01 : f32
    %114 = vector.broadcast %cst_53 : f32 to vector<16x128xf32>
    %115 = arith.mulf %114, %113 : vector<16x128xf32>
    %cst_54 = arith.constant 5.000000e-01 : f32
    %116 = vector.broadcast %cst_54 : f32 to vector<16x128xf32>
    %117 = arith.addf %115, %116 : vector<16x128xf32>
    %c0_55 = arith.constant 0 : index
    %c0_56 = arith.constant 0 : index
    %118 = vector.load %arg3[%c0_55, %c0_56] : memref<128x128xf32, #tpu.memory_space<vmem>>, vector<128x128xf32>
    %cst_57 = arith.constant dense<0.000000e+00> : vector<16x128xf32>
    %119 = tpu.matmul %117, %118, %cst_57 {dimension_numbers = #tpu.dot_dimension_numbers<[1], [0], [0], [1], [0, 0, 1, 1], [], []>} : vector<16x128xf32>, vector<128x128xf32>, vector<16x128xf32> -> vector<16x128xf32>
    %120 = vector.broadcast %2 : vector<1x128xf32> to vector<16x128xf32>
    %121 = arith.addf %119, %120 : vector<16x128xf32>
    %cst_58 = arith.constant 5.000000e-01 : f32
    %122 = vector.broadcast %cst_58 : f32 to vector<16x128xf32>
    %123 = arith.mulf %122, %121 : vector<16x128xf32>
    %124 = math.tanh %123 : vector<16x128xf32>
    %cst_59 = arith.constant 5.000000e-01 : f32
    %125 = vector.broadcast %cst_59 : f32 to vector<16x128xf32>
    %126 = arith.mulf %125, %124 : vector<16x128xf32>
    %cst_60 = arith.constant 5.000000e-01 : f32
    %127 = vector.broadcast %cst_60 : f32 to vector<16x128xf32>
    %128 = arith.addf %126, %127 : vector<16x128xf32>
    %129 = vector.broadcast %3 : vector<1x128xf32> to vector<16x128xf32>
    %130 = arith.mulf %128, %129 : vector<16x128xf32>
    %cst_61 = arith.constant dense<0.000000e+00> : vector<16xf32>
    %131 = vector.multi_reduction <add>, %130, %cst_61 [1] : vector<16x128xf32> to vector<16xf32>
    %132 = vector.shape_cast %131 : vector<16xf32> to vector<1x16xf32>
    %133 = vector.broadcast %4 : vector<1x1xf32> to vector<1x16xf32>
    %134 = arith.addf %132, %133 : vector<1x16xf32>
    %135 = arith.index_cast %c3_i32 : i32 to index
    %c0_62 = arith.constant 0 : index
    %136 = vector.load %arg5[%135, %c0_62] : memref<8x16xf32, #tpu.memory_space<vmem>>, vector<1x16xf32>
    tpu.vector_store %arg5[%135, %c0_62], %134 {strides = array<i32>} : memref<8x16xf32, #tpu.memory_space<vmem>>, vector<1x16xf32>,
    %c4_i32 = arith.constant 4 : i32
    %c16_i32_63 = arith.constant 16 : i32
    %137 = arith.muli %c4_i32, %c16_i32_63 : i32
    %138 = arith.index_cast %137 : i32 to index
    %c0_64 = arith.constant 0 : index
    %139 = vector.load %arg1[%138, %c0_64] : memref<128x22xf32, #tpu.memory_space<vmem>>, vector<16x22xf32>
    %c0_65 = arith.constant 0 : index
    %c0_66 = arith.constant 0 : index
    %140 = vector.load %arg2[%c0_65, %c0_66] : memref<22x128xf32, #tpu.memory_space<vmem>>, vector<22x128xf32>
    %cst_67 = arith.constant dense<0.000000e+00> : vector<16x128xf32>
    %141 = tpu.matmul %139, %140, %cst_67 {dimension_numbers = #tpu.dot_dimension_numbers<[1], [0], [0], [1], [0, 0, 1, 1], [], []>} : vector<16x22xf32>, vector<22x128xf32>, vector<16x128xf32> -> vector<16x128xf32>
    %142 = vector.broadcast %1 : vector<1x128xf32> to vector<16x128xf32>
    %143 = arith.addf %141, %142 : vector<16x128xf32>
    %cst_68 = arith.constant 5.000000e-01 : f32
    %144 = vector.broadcast %cst_68 : f32 to vector<16x128xf32>
    %145 = arith.mulf %144, %143 : vector<16x128xf32>
    %146 = math.tanh %145 : vector<16x128xf32>
    %cst_69 = arith.constant 5.000000e-01 : f32
    %147 = vector.broadcast %cst_69 : f32 to vector<16x128xf32>
    %148 = arith.mulf %147, %146 : vector<16x128xf32>
    %cst_70 = arith.constant 5.000000e-01 : f32
    %149 = vector.broadcast %cst_70 : f32 to vector<16x128xf32>
    %150 = arith.addf %148, %149 : vector<16x128xf32>
    %c0_71 = arith.constant 0 : index
    %c0_72 = arith.constant 0 : index
    %151 = vector.load %arg3[%c0_71, %c0_72] : memref<128x128xf32, #tpu.memory_space<vmem>>, vector<128x128xf32>
    %cst_73 = arith.constant dense<0.000000e+00> : vector<16x128xf32>
    %152 = tpu.matmul %150, %151, %cst_73 {dimension_numbers = #tpu.dot_dimension_numbers<[1], [0], [0], [1], [0, 0, 1, 1], [], []>} : vector<16x128xf32>, vector<128x128xf32>, vector<16x128xf32> -> vector<16x128xf32>
    %153 = vector.broadcast %2 : vector<1x128xf32> to vector<16x128xf32>
    %154 = arith.addf %152, %153 : vector<16x128xf32>
    %cst_74 = arith.constant 5.000000e-01 : f32
    %155 = vector.broadcast %cst_74 : f32 to vector<16x128xf32>
    %156 = arith.mulf %155, %154 : vector<16x128xf32>
    %157 = math.tanh %156 : vector<16x128xf32>
    %cst_75 = arith.constant 5.000000e-01 : f32
    %158 = vector.broadcast %cst_75 : f32 to vector<16x128xf32>
    %159 = arith.mulf %158, %157 : vector<16x128xf32>
    %cst_76 = arith.constant 5.000000e-01 : f32
    %160 = vector.broadcast %cst_76 : f32 to vector<16x128xf32>
    %161 = arith.addf %159, %160 : vector<16x128xf32>
    %162 = vector.broadcast %3 : vector<1x128xf32> to vector<16x128xf32>
    %163 = arith.mulf %161, %162 : vector<16x128xf32>
    %cst_77 = arith.constant dense<0.000000e+00> : vector<16xf32>
    %164 = vector.multi_reduction <add>, %163, %cst_77 [1] : vector<16x128xf32> to vector<16xf32>
    %165 = vector.shape_cast %164 : vector<16xf32> to vector<1x16xf32>
    %166 = vector.broadcast %4 : vector<1x1xf32> to vector<1x16xf32>
    %167 = arith.addf %165, %166 : vector<1x16xf32>
    %168 = arith.index_cast %c4_i32 : i32 to index
    %c0_78 = arith.constant 0 : index
    %169 = vector.load %arg5[%168, %c0_78] : memref<8x16xf32, #tpu.memory_space<vmem>>, vector<1x16xf32>
    tpu.vector_store %arg5[%168, %c0_78], %167 {strides = array<i32>} : memref<8x16xf32, #tpu.memory_space<vmem>>, vector<1x16xf32>,
    %c5_i32 = arith.constant 5 : i32
    %c16_i32_79 = arith.constant 16 : i32
    %170 = arith.muli %c5_i32, %c16_i32_79 : i32
    %171 = arith.index_cast %170 : i32 to index
    %c0_80 = arith.constant 0 : index
    %172 = vector.load %arg1[%171, %c0_80] : memref<128x22xf32, #tpu.memory_space<vmem>>, vector<16x22xf32>
    %c0_81 = arith.constant 0 : index
    %c0_82 = arith.constant 0 : index
    %173 = vector.load %arg2[%c0_81, %c0_82] : memref<22x128xf32, #tpu.memory_space<vmem>>, vector<22x128xf32>
    %cst_83 = arith.constant dense<0.000000e+00> : vector<16x128xf32>
    %174 = tpu.matmul %172, %173, %cst_83 {dimension_numbers = #tpu.dot_dimension_numbers<[1], [0], [0], [1], [0, 0, 1, 1], [], []>} : vector<16x22xf32>, vector<22x128xf32>, vector<16x128xf32> -> vector<16x128xf32>
    %175 = vector.broadcast %1 : vector<1x128xf32> to vector<16x128xf32>
    %176 = arith.addf %174, %175 : vector<16x128xf32>
    %cst_84 = arith.constant 5.000000e-01 : f32
    %177 = vector.broadcast %cst_84 : f32 to vector<16x128xf32>
    %178 = arith.mulf %177, %176 : vector<16x128xf32>
    %179 = math.tanh %178 : vector<16x128xf32>
    %cst_85 = arith.constant 5.000000e-01 : f32
    %180 = vector.broadcast %cst_85 : f32 to vector<16x128xf32>
    %181 = arith.mulf %180, %179 : vector<16x128xf32>
    %cst_86 = arith.constant 5.000000e-01 : f32
    %182 = vector.broadcast %cst_86 : f32 to vector<16x128xf32>
    %183 = arith.addf %181, %182 : vector<16x128xf32>
    %c0_87 = arith.constant 0 : index
    %c0_88 = arith.constant 0 : index
    %184 = vector.load %arg3[%c0_87, %c0_88] : memref<128x128xf32, #tpu.memory_space<vmem>>, vector<128x128xf32>
    %cst_89 = arith.constant dense<0.000000e+00> : vector<16x128xf32>
    %185 = tpu.matmul %183, %184, %cst_89 {dimension_numbers = #tpu.dot_dimension_numbers<[1], [0], [0], [1], [0, 0, 1, 1], [], []>} : vector<16x128xf32>, vector<128x128xf32>, vector<16x128xf32> -> vector<16x128xf32>
    %186 = vector.broadcast %2 : vector<1x128xf32> to vector<16x128xf32>
    %187 = arith.addf %185, %186 : vector<16x128xf32>
    %cst_90 = arith.constant 5.000000e-01 : f32
    %188 = vector.broadcast %cst_90 : f32 to vector<16x128xf32>
    %189 = arith.mulf %188, %187 : vector<16x128xf32>
    %190 = math.tanh %189 : vector<16x128xf32>
    %cst_91 = arith.constant 5.000000e-01 : f32
    %191 = vector.broadcast %cst_91 : f32 to vector<16x128xf32>
    %192 = arith.mulf %191, %190 : vector<16x128xf32>
    %cst_92 = arith.constant 5.000000e-01 : f32
    %193 = vector.broadcast %cst_92 : f32 to vector<16x128xf32>
    %194 = arith.addf %192, %193 : vector<16x128xf32>
    %195 = vector.broadcast %3 : vector<1x128xf32> to vector<16x128xf32>
    %196 = arith.mulf %194, %195 : vector<16x128xf32>
    %cst_93 = arith.constant dense<0.000000e+00> : vector<16xf32>
    %197 = vector.multi_reduction <add>, %196, %cst_93 [1] : vector<16x128xf32> to vector<16xf32>
    %198 = vector.shape_cast %197 : vector<16xf32> to vector<1x16xf32>
    %199 = vector.broadcast %4 : vector<1x1xf32> to vector<1x16xf32>
    %200 = arith.addf %198, %199 : vector<1x16xf32>
    %201 = arith.index_cast %c5_i32 : i32 to index
    %c0_94 = arith.constant 0 : index
    %202 = vector.load %arg5[%201, %c0_94] : memref<8x16xf32, #tpu.memory_space<vmem>>, vector<1x16xf32>
    tpu.vector_store %arg5[%201, %c0_94], %200 {strides = array<i32>} : memref<8x16xf32, #tpu.memory_space<vmem>>, vector<1x16xf32>,
    %c6_i32 = arith.constant 6 : i32
    %c16_i32_95 = arith.constant 16 : i32
    %203 = arith.muli %c6_i32, %c16_i32_95 : i32
    %204 = arith.index_cast %203 : i32 to index
    %c0_96 = arith.constant 0 : index
    %205 = vector.load %arg1[%204, %c0_96] : memref<128x22xf32, #tpu.memory_space<vmem>>, vector<16x22xf32>
    %c0_97 = arith.constant 0 : index
    %c0_98 = arith.constant 0 : index
    %206 = vector.load %arg2[%c0_97, %c0_98] : memref<22x128xf32, #tpu.memory_space<vmem>>, vector<22x128xf32>
    %cst_99 = arith.constant dense<0.000000e+00> : vector<16x128xf32>
    %207 = tpu.matmul %205, %206, %cst_99 {dimension_numbers = #tpu.dot_dimension_numbers<[1], [0], [0], [1], [0, 0, 1, 1], [], []>} : vector<16x22xf32>, vector<22x128xf32>, vector<16x128xf32> -> vector<16x128xf32>
    %208 = vector.broadcast %1 : vector<1x128xf32> to vector<16x128xf32>
    %209 = arith.addf %207, %208 : vector<16x128xf32>
    %cst_100 = arith.constant 5.000000e-01 : f32
    %210 = vector.broadcast %cst_100 : f32 to vector<16x128xf32>
    %211 = arith.mulf %210, %209 : vector<16x128xf32>
    %212 = math.tanh %211 : vector<16x128xf32>
    %cst_101 = arith.constant 5.000000e-01 : f32
    %213 = vector.broadcast %cst_101 : f32 to vector<16x128xf32>
    %214 = arith.mulf %213, %212 : vector<16x128xf32>
    %cst_102 = arith.constant 5.000000e-01 : f32
    %215 = vector.broadcast %cst_102 : f32 to vector<16x128xf32>
    %216 = arith.addf %214, %215 : vector<16x128xf32>
    %c0_103 = arith.constant 0 : index
    %c0_104 = arith.constant 0 : index
    %217 = vector.load %arg3[%c0_103, %c0_104] : memref<128x128xf32, #tpu.memory_space<vmem>>, vector<128x128xf32>
    %cst_105 = arith.constant dense<0.000000e+00> : vector<16x128xf32>
    %218 = tpu.matmul %216, %217, %cst_105 {dimension_numbers = #tpu.dot_dimension_numbers<[1], [0], [0], [1], [0, 0, 1, 1], [], []>} : vector<16x128xf32>, vector<128x128xf32>, vector<16x128xf32> -> vector<16x128xf32>
    %219 = vector.broadcast %2 : vector<1x128xf32> to vector<16x128xf32>
    %220 = arith.addf %218, %219 : vector<16x128xf32>
    %cst_106 = arith.constant 5.000000e-01 : f32
    %221 = vector.broadcast %cst_106 : f32 to vector<16x128xf32>
    %222 = arith.mulf %221, %220 : vector<16x128xf32>
    %223 = math.tanh %222 : vector<16x128xf32>
    %cst_107 = arith.constant 5.000000e-01 : f32
    %224 = vector.broadcast %cst_107 : f32 to vector<16x128xf32>
    %225 = arith.mulf %224, %223 : vector<16x128xf32>
    %cst_108 = arith.constant 5.000000e-01 : f32
    %226 = vector.broadcast %cst_108 : f32 to vector<16x128xf32>
    %227 = arith.addf %225, %226 : vector<16x128xf32>
    %228 = vector.broadcast %3 : vector<1x128xf32> to vector<16x128xf32>
    %229 = arith.mulf %227, %228 : vector<16x128xf32>
    %cst_109 = arith.constant dense<0.000000e+00> : vector<16xf32>
    %230 = vector.multi_reduction <add>, %229, %cst_109 [1] : vector<16x128xf32> to vector<16xf32>
    %231 = vector.shape_cast %230 : vector<16xf32> to vector<1x16xf32>
    %232 = vector.broadcast %4 : vector<1x1xf32> to vector<1x16xf32>
    %233 = arith.addf %231, %232 : vector<1x16xf32>
    %234 = arith.index_cast %c6_i32 : i32 to index
    %c0_110 = arith.constant 0 : index
    %235 = vector.load %arg5[%234, %c0_110] : memref<8x16xf32, #tpu.memory_space<vmem>>, vector<1x16xf32>
    tpu.vector_store %arg5[%234, %c0_110], %233 {strides = array<i32>} : memref<8x16xf32, #tpu.memory_space<vmem>>, vector<1x16xf32>,
    %c7_i32 = arith.constant 7 : i32
    %c16_i32_111 = arith.constant 16 : i32
    %236 = arith.muli %c7_i32, %c16_i32_111 : i32
    %237 = arith.index_cast %236 : i32 to index
    %c0_112 = arith.constant 0 : index
    %238 = vector.load %arg1[%237, %c0_112] : memref<128x22xf32, #tpu.memory_space<vmem>>, vector<16x22xf32>
    %c0_113 = arith.constant 0 : index
    %c0_114 = arith.constant 0 : index
    %239 = vector.load %arg2[%c0_113, %c0_114] : memref<22x128xf32, #tpu.memory_space<vmem>>, vector<22x128xf32>
    %cst_115 = arith.constant dense<0.000000e+00> : vector<16x128xf32>
    %240 = tpu.matmul %238, %239, %cst_115 {dimension_numbers = #tpu.dot_dimension_numbers<[1], [0], [0], [1], [0, 0, 1, 1], [], []>} : vector<16x22xf32>, vector<22x128xf32>, vector<16x128xf32> -> vector<16x128xf32>
    %241 = vector.broadcast %1 : vector<1x128xf32> to vector<16x128xf32>
    %242 = arith.addf %240, %241 : vector<16x128xf32>
    %cst_116 = arith.constant 5.000000e-01 : f32
    %243 = vector.broadcast %cst_116 : f32 to vector<16x128xf32>
    %244 = arith.mulf %243, %242 : vector<16x128xf32>
    %245 = math.tanh %244 : vector<16x128xf32>
    %cst_117 = arith.constant 5.000000e-01 : f32
    %246 = vector.broadcast %cst_117 : f32 to vector<16x128xf32>
    %247 = arith.mulf %246, %245 : vector<16x128xf32>
    %cst_118 = arith.constant 5.000000e-01 : f32
    %248 = vector.broadcast %cst_118 : f32 to vector<16x128xf32>
    %249 = arith.addf %247, %248 : vector<16x128xf32>
    %c0_119 = arith.constant 0 : index
    %c0_120 = arith.constant 0 : index
    %250 = vector.load %arg3[%c0_119, %c0_120] : memref<128x128xf32, #tpu.memory_space<vmem>>, vector<128x128xf32>
    %cst_121 = arith.constant dense<0.000000e+00> : vector<16x128xf32>
    %251 = tpu.matmul %249, %250, %cst_121 {dimension_numbers = #tpu.dot_dimension_numbers<[1], [0], [0], [1], [0, 0, 1, 1], [], []>} : vector<16x128xf32>, vector<128x128xf32>, vector<16x128xf32> -> vector<16x128xf32>
    %252 = vector.broadcast %2 : vector<1x128xf32> to vector<16x128xf32>
    %253 = arith.addf %251, %252 : vector<16x128xf32>
    %cst_122 = arith.constant 5.000000e-01 : f32
    %254 = vector.broadcast %cst_122 : f32 to vector<16x128xf32>
    %255 = arith.mulf %254, %253 : vector<16x128xf32>
    %256 = math.tanh %255 : vector<16x128xf32>
    %cst_123 = arith.constant 5.000000e-01 : f32
    %257 = vector.broadcast %cst_123 : f32 to vector<16x128xf32>
    %258 = arith.mulf %257, %256 : vector<16x128xf32>
    %cst_124 = arith.constant 5.000000e-01 : f32
    %259 = vector.broadcast %cst_124 : f32 to vector<16x128xf32>
    %260 = arith.addf %258, %259 : vector<16x128xf32>
    %261 = vector.broadcast %3 : vector<1x128xf32> to vector<16x128xf32>
    %262 = arith.mulf %260, %261 : vector<16x128xf32>
    %cst_125 = arith.constant dense<0.000000e+00> : vector<16xf32>
    %263 = vector.multi_reduction <add>, %262, %cst_125 [1] : vector<16x128xf32> to vector<16xf32>
    %264 = vector.shape_cast %263 : vector<16xf32> to vector<1x16xf32>
    %265 = vector.broadcast %4 : vector<1x1xf32> to vector<1x16xf32>
    %266 = arith.addf %264, %265 : vector<1x16xf32>
    %267 = arith.index_cast %c7_i32 : i32 to index
    %c0_126 = arith.constant 0 : index
    %268 = vector.load %arg5[%267, %c0_126] : memref<8x16xf32, #tpu.memory_space<vmem>>, vector<1x16xf32>
    tpu.vector_store %arg5[%267, %c0_126], %266 {strides = array<i32>} : memref<8x16xf32, #tpu.memory_space<vmem>>, vector<1x16xf32>,
    %c8_i32 = arith.constant 8 : i32
    return
  }
  func.func @transform_0(%arg0: i32) -> (i32, i32) {
    %c0_i32 = arith.constant 0 : i32
    %c0_i32_0 = arith.constant 0 : i32
    return %arg0, %c0_i32 : i32, i32
  }
  func.func @transform_1(%arg0: i32) -> (i32, i32) {
    %c0_i32 = arith.constant 0 : i32
    %c0_i32_0 = arith.constant 0 : i32
    %c0_i32_1 = arith.constant 0 : i32
    return %c0_i32, %c0_i32_0 : i32, i32
  }
  func.func @transform_2(%arg0: i32) -> (i32, i32) {
    %c0_i32 = arith.constant 0 : i32
    %c0_i32_0 = arith.constant 0 : i32
    %c0_i32_1 = arith.constant 0 : i32
    return %c0_i32, %c0_i32_0 : i32, i32
  }
  func.func @transform_3(%arg0: i32) -> (i32, i32) {
    %c0_i32 = arith.constant 0 : i32
    %c0_i32_0 = arith.constant 0 : i32
    %c0_i32_1 = arith.constant 0 : i32
    return %c0_i32, %c0_i32_0 : i32, i32
  }
  func.func @transform_4(%arg0: i32) -> (i32, i32) {
    %c0_i32 = arith.constant 0 : i32
    %c0_i32_0 = arith.constant 0 : i32
    return %arg0, %c0_i32 : i32, i32
  }
}

</mosaic_0001>

<bundles_post_ra>
// kernel: tpu_custom_call.1
= control target key start
LH: loop header
LB: loop body
LE: loop exit
PB: predicated region body
PF: predicated region fallthrough
CT: control target
= control target key end

     0   :  { %9 = vsyncpa [#allocation3], 0  ;;  %s1595_s0 = inlined_call_operand.vmem [shape: f32[128,22], index: 0, kind: input, shape index: {}]   ;;  %s1596_s1 = inlined_call_operand.vmem [shape: f32[22,128], index: 1, kind: input, shape index: {}]   ;;  %s1597_s2 = inlined_call_operand.vmem [shape: f32[128,128], index: 2, kind: input, shape index: {}]   ;;  %s1598_s3 = inlined_call_operand.hbm [shape: f32[8,128], index: 3, kind: input, shape index: {}]   ;;  %s1599_s4 = inlined_call_operand.hbm [shape: f32[8,16], index: 4, kind: output, shape index: {}]  }
   0x1   :  { %10 = vsyncpa [#allocation4], 0  ;;  %s22_s17 = sshll.u32 %s1598_s3, 4  ;;  %s1116_s18 = smov [#allocation2]   ;;  %s23_s17 = int_to_ptr.hbm [resolvable:$true] %s22_s17 }
   0x2   :  { %s24_s19 = sshll.u32 %s1116_s18, 4  ;;  %s25_s19 = int_to_ptr.vmem [resolvable:$true] %s24_s19 }
   0x3   :  { %27 = dma.hbm_to_vmem [thread:$0]  %s23_s17, 128, %s25_s19, [#allocation3]  }
   0x4   :  { %1112 = dma.done.wait [#allocation3], 128  }
   0x5   :  { %1113 = vsyncadd [#allocation3], 4294967168  ;;  %vm46_vm0 = vcmask 1045504   ;;  %v37_v0 = vld [vmem:[%s1596_s1 + $0x10] sm:$0x3f]  ;;  %v1156_v2 = vld [vmem:[%s1596_s1 + $0x8] sm:$0xff] }
   0x6   :  { %v166_v1 = vld [vmem:[%s1596_s1 + $0x10] sm:$0x3f]  ;;  %970 = vmatpush.msk.msra.mxu0 %vm46_vm0, %v37_v0  ;;  %v1163_v3 = vld [vmem:[%s1596_s1] sm:$0xff]  ;;  %vm39_vm1 = vcmask 179200   ;;  %v34_v8 = vld [vmem:[%s1595_s0 + $0x8] sm:$0xff]  ;;  %vm157_vm2 = vcmask 130112  }
   0x7   :  { %973 = vmatpush.msk.msra.mxu3 %vm46_vm0, %v166_v1  ;;  %v33_v4 = vld [vmem:[%s1595_s0] sm:$0xff]  ;;  %v162_v5 = vld [vmem:[%s1595_s0 + $0x10] sm:$0xff]  ;;  %v163_v9 = vld [vmem:[%s1595_s0 + $0x18] sm:$0xff]  ;;  %vm160_vm3 = vcmask 122880   ;;  %s960_s24 = sshll.u32 %s1599_s4, 4  ;;  %s961_s24 = int_to_ptr.hbm [resolvable:$true] %s960_s24 }
   0x8   :  { %64 = vmatpush.msra.mxu0 %v1156_v2  ;;  %v279_v6 = vld [vmem:[%s1596_s1 + $0x10] sm:$0x3f]  ;;  %v1198_v10 = vld [vmem:[%s1597_s2 + $0x78] sm:$0xff]  ;;  %v1210_v12 = vld [vmem:[%s1597_s2 + $0x68] sm:$0xff] }
   0x9   :  { %190 = vmatpush.msra.mxu3 %v1156_v2  ;;  %v392_v7 = vld [vmem:[%s1596_s1 + $0x10] sm:$0x3f]  ;;  %98 = vmatpush.msra.mxu1 %v1198_v10  ;;  %v1219_v13 = vld [vmem:[%s1597_s2 + $0x60] sm:$0xff]  ;;  %v1230_v15 = vld [vmem:[%s1597_s2 + $0x58] sm:$0xff] }
   0xa   :  { %65 = vmatpush.msra.mxu0 %v1163_v3  ;;  %v1203_v11 = vld [vmem:[%s1597_s2 + $0x70] sm:$0xff]  ;;  %336 = vmatpush.msra.mxu2 %v1198_v10  ;;  %v275_v14 = vld [vmem:[%s1595_s0 + $0x20] sm:$0xff]  ;;  %v1247_v17 = vld [vmem:[%s1597_s2 + $0x48] sm:$0xff] }
   0xb   :  { %191 = vmatpush.msra.mxu3 %v1163_v3  ;;  %971 = vmatmul.msk.f32.vlgmr.msra.gmra.mxu0 %vm39_vm1, %v33_v4  ;;  %v1239_v16 = vld [vmem:[%s1597_s2 + $0x50] sm:$0xff]  ;;  %v1256_v18 = vld [vmem:[%s1597_s2 + $0x40] sm:$0xff]  ;;  %v276_v19 = vld [vmem:[%s1595_s0 + $0x28] sm:$0xff] }
   0xc   :  { %974 = vmatmul.msk.f32.vlgmr.msra.gmra.mxu3 %vm39_vm1, %v162_v5  ;;  %976 = vmatpush.msk.msrb.mxu0 %vm46_vm0, %v279_v6  ;;  %v388_v20 = vld [vmem:[%s1595_s0 + $0x30] sm:$0xff]  ;;  %v389_v21 = vld [vmem:[%s1595_s0 + $0x38] sm:$0xff]  ;;  %v1304_v24 = vld [vmem:[%s1597_s2 + $0x28] sm:$0xff] }
   0xd   :  { %223 = vmatpush.msrb.mxu3 %v1198_v10  ;;  %99 = vmatpush.msra.mxu1 %v1203_v11  ;;  %v1288_v22 = vld [vmem:[%s1597_s2 + $0x38] sm:$0xff]  ;;  %v1295_v23 = vld [vmem:[%s1597_s2 + $0x30] sm:$0xff]  ;;  %v1313_v25 = vld [vmem:[%s1597_s2 + $0x20] sm:$0xff] }
   0xe   :  { %303 = vmatpush.msrb.mxu0 %v1156_v2  ;;  %337 = vmatpush.msra.mxu2 %v1203_v11  ;;  %v1322_v26 = vld [vmem:[%s1597_s2 + $0x18] sm:$0xff]  ;;  %v1331_v27 = vld [vmem:[%s1597_s2 + $0x10] sm:$0xff]  ;;  %v1340_v28 = vld [vmem:[%s1597_s2 + $0x8] sm:$0xff] }
   0xf   :  { %224 = vmatpush.msrb.mxu3 %v1203_v11  ;;  %100 = vmatpush.msra.mxu1 %v1210_v12  ;;  %v1349_v29 = vld [vmem:[%s1597_s2] sm:$0xff]  ;;  %v505_v45 = vld [vmem:[%s1596_s1 + $0x10] sm:$0x3f] }
  0x10   :  { %304 = vmatpush.msrb.mxu0 %v1163_v3  ;;  %338 = vmatpush.msra.mxu2 %v1210_v12  ;;  %v1362_v30 = vld [vmem:[#allocation2] sm:$0xff]  ;;  %v618_v46 = vld [vmem:[%s1596_s1 + $0x10] sm:$0x3f] }
  0x11   :  { %225 = vmatpush.msrb.mxu3 %v1210_v12  ;;  %101 = vmatpush.msra.mxu1 %v1219_v13  ;;  %v1367_v31 = vperm.slane %v1362_v30, 0  ;;  %v731_v5 = vld [vmem:[%s1596_s1 + $0x10] sm:$0x3f] }
  0x12   :  { %979 = vmatpush.msk.msra.mxu0 %vm46_vm0, %v392_v7  ;;  %339 = vmatpush.msra.mxu2 %v1219_v13 }
  0x13   :  { %972 = vmatmul.msk.f32.gmra.mxu0 %vm39_vm1, %v34_v8  ;;  %226 = vmatpush.msrb.mxu3 %v1219_v13 }
  0x14   :  { %975 = vmatmul.msk.f32.gmra.mxu3 %vm39_vm1, %v163_v9  ;;  %416 = vmatpush.msra.mxu0 %v1156_v2 }
  0x15   :  { %102 = vmatpush.msra.mxu1 %v1230_v15  ;;  %227 = vmatpush.msrb.mxu3 %v1230_v15 }
  0x16   :  { %417 = vmatpush.msra.mxu0 %v1163_v3  ;;  %340 = vmatpush.msra.mxu2 %v1230_v15 }
  0x17   :  { %103 = vmatpush.msra.mxu1 %v1239_v16  ;;  %228 = vmatpush.msrb.mxu3 %v1239_v16 }
  0x18   :  { %341 = vmatpush.msra.mxu2 %v1239_v16 }
  0x19   :  { %104 = vmatpush.msra.mxu1 %v1247_v17  ;;  %229 = vmatpush.msrb.mxu3 %v1247_v17 }
  0x1a   :  { %342 = vmatpush.msra.mxu2 %v1247_v17 }
  0x1b   :  { %977 = vmatmul.msk.f32.vlgmr.msrb.gmra.mxu0 %vm39_vm1, %v275_v14  ;;  %105 = vmatpush.msra.mxu1 %v1256_v18  ;;  %v501_v14 = vld [vmem:[%s1595_s0 + $0x40] sm:$0xff] }
  0x1c   :  { %562 = vmatpush.msrb.mxu0 %v1198_v10  ;;  %230 = vmatpush.msrb.mxu3 %v1256_v18 }
  0x1d   :  { %343 = vmatpush.msra.mxu2 %v1256_v18  ;;  %106 = vmatpush.msra.mxu1 %v1288_v22 }
  0x1e   :  { %563 = vmatpush.msrb.mxu0 %v1203_v11  ;;  %231 = vmatpush.msrb.mxu3 %v1288_v22 }
  0x1f   :  { %344 = vmatpush.msra.mxu2 %v1288_v22  ;;  %107 = vmatpush.msra.mxu1 %v1295_v23 }
  0x20   :  { %564 = vmatpush.msrb.mxu0 %v1210_v12  ;;  %232 = vmatpush.msrb.mxu3 %v1295_v23 }
  0x21   :  { %345 = vmatpush.msra.mxu2 %v1295_v23  ;;  %108 = vmatpush.msra.mxu1 %v1304_v24 }
  0x22   :  { %565 = vmatpush.msrb.mxu0 %v1219_v13  ;;  %233 = vmatpush.msrb.mxu3 %v1304_v24 }
  0x23   :  { %978 = vmatmul.msk.f32.gmra.mxu0 %vm39_vm1, %v276_v19  ;;  %346 = vmatpush.msra.mxu2 %v1304_v24 }
  0x24   :  { %566 = vmatpush.msrb.mxu0 %v1230_v15  ;;  %109 = vmatpush.msra.mxu1 %v1313_v25 }
  0x25   :  { %234 = vmatpush.msrb.mxu3 %v1313_v25  ;;  %347 = vmatpush.msra.mxu2 %v1313_v25 }
  0x26   :  { %567 = vmatpush.msrb.mxu0 %v1239_v16  ;;  %110 = vmatpush.msra.mxu1 %v1322_v26 }
  0x27   :  { %235 = vmatpush.msrb.mxu3 %v1322_v26  ;;  %348 = vmatpush.msra.mxu2 %v1322_v26 }
  0x28   :  { %568 = vmatpush.msrb.mxu0 %v1247_v17  ;;  %111 = vmatpush.msra.mxu1 %v1331_v27 }
  0x29   :  { %236 = vmatpush.msrb.mxu3 %v1331_v27  ;;  %349 = vmatpush.msra.mxu2 %v1331_v27 }
  0x2a   :  { %569 = vmatpush.msrb.mxu0 %v1256_v18  ;;  %112 = vmatpush.msra.mxu1 %v1340_v28 }
  0x2b   :  { %980 = vmatmul.msk.f32.vlgmr.msra.gmra.mxu0 %vm39_vm1, %v388_v20  ;;  %237 = vmatpush.msrb.mxu3 %v1340_v28 }
  0x2c   :  { %570 = vmatpush.msrb.mxu0 %v1288_v22  ;;  %350 = vmatpush.msra.mxu2 %v1340_v28 }
  0x2d   :  { %113 = vmatpush.msra.mxu1 %v1349_v29  ;;  %238 = vmatpush.msrb.mxu3 %v1349_v29 }
  0x2e   :  { %571 = vmatpush.msrb.mxu0 %v1295_v23  ;;  %351 = vmatpush.msra.mxu2 %v1349_v29 }
  0x2f   :  { %449 = vmatpush.msrb.mxu1 %v1198_v10  ;;  %982 = vmatpush.msk.msra.mxu3 %vm46_vm0, %v505_v45 }
  0x30   :  { %572 = vmatpush.msrb.mxu0 %v1304_v24  ;;  %985 = vmatpush.msk.msrb.mxu2 %vm46_vm0, %v618_v46 }
  0x31   :  { %450 = vmatpush.msrb.mxu1 %v1203_v11  ;;  %529 = vmatpush.msra.mxu3 %v1156_v2 }
  0x32   :  { %573 = vmatpush.msrb.mxu0 %v1313_v25  ;;  %642 = vmatpush.msrb.mxu2 %v1156_v2 }
  0x33   :  { %981 = vmatmul.msk.f32.gmra.mxu0 %vm39_vm1, %v389_v21  ;;  %451 = vmatpush.msrb.mxu1 %v1210_v12 }
  0x34   :  { %574 = vmatpush.msrb.mxu0 %v1322_v26  ;;  %530 = vmatpush.msra.mxu3 %v1163_v3 }
  0x35   :  { %452 = vmatpush.msrb.mxu1 %v1219_v13  ;;  %643 = vmatpush.msrb.mxu2 %v1163_v3 }
  0x36   :  { %575 = vmatpush.msrb.mxu0 %v1331_v27 }
  0x37   :  { %453 = vmatpush.msrb.mxu1 %v1230_v15 }
  0x38   :  { %576 = vmatpush.msrb.mxu0 %v1340_v28 }
  0x39   :  { %454 = vmatpush.msrb.mxu1 %v1239_v16 }
  0x3a   :  { %577 = vmatpush.msrb.mxu0 %v1349_v29 }
  0x3b   :  { %455 = vmatpush.msrb.mxu1 %v1247_v17 }
  0x3d   :  { %456 = vmatpush.msrb.mxu1 %v1256_v18 }
  0x3f   :  { %457 = vmatpush.msrb.mxu1 %v1288_v22 }
  0x41   :  { %458 = vmatpush.msrb.mxu1 %v1295_v23 }
  0x43   :  { %459 = vmatpush.msrb.mxu1 %v1304_v24 }
  0x45   :  { %460 = vmatpush.msrb.mxu1 %v1313_v25 }
  0x47   :  { %461 = vmatpush.msrb.mxu1 %v1322_v26 }
  0x49   :  { %462 = vmatpush.msrb.mxu1 %v1331_v27 }
  0x4b   :  { %463 = vmatpush.msrb.mxu1 %v1340_v28 }
  0x4d   :  { %464 = vmatpush.msrb.mxu1 %v1349_v29 }
  0x88   :  { %v67_v32 = vpop.f32.mrf.mxu0 }
  0x89   :  { %v68_v33 = vadd.f32 %v67_v32, %v1367_v31 }
  0x8b   :  { %v73_v34 = vmul.f32 0.5, %v68_v33  ;;  %v1117_v33 = vmov 0  }
  0x8c   :  { %997 = vset.pattern.permute.xlu1 %v1117_v33  ;;  %998 = vset.pattern.permute.xlu2 %v1117_v33 }
  0x8d   :  { %1000 = vtanh.f32 %v73_v34  ;;  %138 = vperm.xlu1 %997, %v1362_v30   ;;  %999 = vset.pattern.permute.xlu0 %v1117_v33 }
  0x8f   :  { %v193_v35 = vpop.f32.mrf.mxu3 }
  0x90   :  { %v194_v36 = vadd.f32 %v193_v35, %v1367_v31  ;;  %v70_v37 = vpop.f32.mrf.mxu0 }
  0x91   :  { %v71_v39 = vadd.f32 %v70_v37, %v1367_v31 }
  0x92   :  { %v199_v38 = vmul.f32 0.5, %v194_v36  ;;  %v502_v36 = vld [vmem:[%s1595_s0 + $0x48] sm:$0xff] }
  0x93   :  { %v1001_v40 = vpop.eup %1000  ;;  %v74_v41 = vmul.f32 0.5, %v71_v39 }
  0x94   :  { %1002 = vtanh.f32 %v199_v38  ;;  %v77_v42 = vmul.f32 0.5, %v1001_v40  ;;  %v614_v38 = vld [vmem:[%s1595_s0 + $0x50] sm:$0xff] }
  0x95   :  { %1004 = vtanh.f32 %v74_v41 }
  0x96   :  { %v79_v44 = vadd.f32 0.5, %v77_v42  ;;  %v615_v42 = vld [vmem:[%s1595_s0 + $0x58] sm:$0xff] }
  0x97   :  { %v196_v43 = vpop.f32.mrf.mxu3 }
  0x98   :  { %v197_v47 = vadd.f32 %v196_v43, %v1367_v31  ;;  %114 = vmatmul.f32.vlgmr.msra.gmra.mxu1 %v79_v44  ;;  %v306_v48 = vpop.f32.mrf.mxu0 }
  0x99   :  { %v307_v51 = vadd.f32 %v306_v48, %v1367_v31  ;;  %788 = vmatpush.msra.mxu1 %v1198_v10 }
  0x9a   :  { %v1003_v49 = vpop.eup %1002  ;;  %v200_v50 = vmul.f32 0.5, %v197_v47 }
  0x9b   :  { %v203_v52 = vmul.f32 0.5, %v1003_v49  ;;  %v1005_v53 = vpop.eup %1004  ;;  %v312_v54 = vmul.f32 0.5, %v307_v51  ;;  %789 = vmatpush.msra.mxu1 %v1203_v11 }
  0x9c   :  { %1006 = vtanh.f32 %v200_v50  ;;  %v78_v56 = vmul.f32 0.5, %v1005_v53 }
  0x9d   :  { %v205_v55 = vadd.f32 0.5, %v203_v52  ;;  %1008 = vtanh.f32 %v312_v54  ;;  %790 = vmatpush.msra.mxu1 %v1210_v12 }
  0x9e   :  { %v80_v57 = vadd.f32 0.5, %v78_v56 }
  0x9f   :  { %239 = vmatmul.f32.vlgmr.msrb.gmra.mxu3 %v205_v55  ;;  %791 = vmatpush.msra.mxu1 %v1219_v13 }
  0xa0   :  { %675 = vmatpush.msrb.mxu3 %v1198_v10  ;;  %117 = vmatmul.f32.gmra.mxu1 %v80_v57  ;;  %v309_v58 = vpop.f32.mrf.mxu0 }
  0xa1   :  { %v310_v60 = vadd.f32 %v309_v58, %v1367_v31  ;;  %792 = vmatpush.msra.mxu1 %v1230_v15 }
  0xa2   :  { %v1007_v59 = vpop.eup %1006  ;;  %676 = vmatpush.msrb.mxu3 %v1203_v11 }
  0xa3   :  { %v204_v61 = vmul.f32 0.5, %v1007_v59  ;;  %v1009_v62 = vpop.eup %1008  ;;  %v313_v63 = vmul.f32 0.5, %v310_v60  ;;  %793 = vmatpush.msra.mxu1 %v1239_v16 }
  0xa4   :  { %677 = vmatpush.msrb.mxu3 %v1210_v12  ;;  %v316_v1 = vmul.f32 0.5, %v1009_v62 }
  0xa5   :  { %v206_v0 = vadd.f32 0.5, %v204_v61  ;;  %1010 = vtanh.f32 %v313_v63  ;;  %794 = vmatpush.msra.mxu1 %v1247_v17 }
  0xa6   :  { %678 = vmatpush.msrb.mxu3 %v1219_v13  ;;  %v318_v4 = vadd.f32 0.5, %v316_v1 }
  0xa7   :  { %242 = vmatmul.f32.gmra.mxu3 %v206_v0  ;;  %795 = vmatpush.msra.mxu1 %v1256_v18 }
  0xa8   :  { %679 = vmatpush.msrb.mxu3 %v1230_v15  ;;  %352 = vmatmul.f32.vlgmr.msra.gmra.mxu2 %v318_v4  ;;  %v419_v6 = vpop.f32.mrf.mxu0 }
  0xa9   :  { %v420_v7 = vadd.f32 %v419_v6, %v1367_v31  ;;  %988 = vmatpush.msk.msra.mxu2 %vm46_vm0, %v731_v5  ;;  %796 = vmatpush.msra.mxu1 %v1288_v22 }
  0xaa   :  { %680 = vmatpush.msrb.mxu3 %v1239_v16 }
  0xab   :  { %v1011_v8 = vpop.eup %1010  ;;  %v425_v9 = vmul.f32 0.5, %v420_v7  ;;  %755 = vmatpush.msra.mxu2 %v1156_v2  ;;  %797 = vmatpush.msra.mxu1 %v1295_v23 }
  0xac   :  { %681 = vmatpush.msrb.mxu3 %v1247_v17  ;;  %v317_v19 = vmul.f32 0.5, %v1011_v8 }
  0xad   :  { %1012 = vtanh.f32 %v425_v9  ;;  %756 = vmatpush.msra.mxu2 %v1163_v3  ;;  %798 = vmatpush.msra.mxu1 %v1304_v24 }
  0xae   :  { %682 = vmatpush.msrb.mxu3 %v1256_v18  ;;  %v319_v20 = vadd.f32 0.5, %v317_v19 }
  0xaf   :  { %983 = vmatmul.msk.f32.vlgmr.msra.gmra.mxu3 %vm39_vm1, %v501_v14  ;;  %799 = vmatpush.msra.mxu1 %v1313_v25 }
  0xb0   :  { %683 = vmatpush.msrb.mxu3 %v1288_v22  ;;  %355 = vmatmul.f32.gmra.mxu2 %v319_v20  ;;  %v422_v21 = vpop.f32.mrf.mxu0 }
  0xb1   :  { %v423_v32 = vadd.f32 %v422_v21, %v1367_v31  ;;  %800 = vmatpush.msra.mxu1 %v1322_v26 }
  0xb2   :  { %684 = vmatpush.msrb.mxu3 %v1295_v23 }
  0xb3   :  { %v1013_v34 = vpop.eup %1012  ;;  %v426_v35 = vmul.f32 0.5, %v423_v32  ;;  %801 = vmatpush.msra.mxu1 %v1331_v27 }
  0xb4   :  { %685 = vmatpush.msrb.mxu3 %v1304_v24  ;;  %v429_v37 = vmul.f32 0.5, %v1013_v34  ;;  %v844_v34 = vld [vmem:[%s1596_s1 + $0x10] sm:$0x3f] }
  0xb5   :  { %1014 = vtanh.f32 %v426_v35  ;;  %802 = vmatpush.msra.mxu1 %v1340_v28  ;;  %991 = vmatpush.msk.msra.mxu0 %vm46_vm0, %v844_v34 }
  0xb6   :  { %686 = vmatpush.msrb.mxu3 %v1313_v25  ;;  %v431_v39 = vadd.f32 0.5, %v429_v37 }
  0xb7   :  { %984 = vmatmul.msk.f32.gmra.mxu3 %vm39_vm1, %v502_v36  ;;  %803 = vmatpush.msra.mxu1 %v1349_v29 }
  0xb8   :  { %687 = vmatpush.msrb.mxu3 %v1322_v26  ;;  %465 = vmatmul.f32.vlgmr.msrb.gmra.mxu1 %v431_v39 }
  0xb9   :  { %986 = vmatmul.msk.f32.vlgmr.msrb.gmra.mxu2 %vm39_vm1, %v614_v38  ;;  %868 = vmatpush.msra.mxu0 %v1156_v2 }
  0xba   :  { %688 = vmatpush.msrb.mxu3 %v1331_v27  ;;  %901 = vmatpush.msrb.mxu2 %v1198_v10  ;;  %v727_v10 = vld [vmem:[%s1595_s0 + $0x60] sm:$0xff] }
  0xbb   :  { %v1015_v40 = vpop.eup %1014  ;;  %869 = vmatpush.msra.mxu0 %v1163_v3 }
  0xbc   :  { %689 = vmatpush.msrb.mxu3 %v1340_v28  ;;  %v430_v41 = vmul.f32 0.5, %v1015_v40  ;;  %902 = vmatpush.msrb.mxu2 %v1203_v11  ;;  %v728_v11 = vld [vmem:[%s1595_s0 + $0x68] sm:$0xff] }
  0xbe   :  { %690 = vmatpush.msrb.mxu3 %v1349_v29  ;;  %v432_v43 = vadd.f32 0.5, %v430_v41  ;;  %903 = vmatpush.msrb.mxu2 %v1210_v12  ;;  %v1478_v12 = vperm.slane %v1362_v30, 1 }
  0xc0   :  { %468 = vmatmul.f32.gmra.mxu1 %v432_v43  ;;  %904 = vmatpush.msrb.mxu2 %v1219_v13 }
  0xc1   :  { %987 = vmatmul.msk.f32.gmra.mxu2 %vm39_vm1, %v615_v42 }
  0xc2   :  { %905 = vmatpush.msrb.mxu2 %v1230_v15 }
  0xc4   :  { %906 = vmatpush.msrb.mxu2 %v1239_v16 }
  0xc6   :  { %907 = vmatpush.msrb.mxu2 %v1247_v17 }
  0xc8   :  { %908 = vmatpush.msrb.mxu2 %v1256_v18 }
  0xc9   :  { %989 = vmatmul.msk.f32.vlgmr.msra.gmra.mxu2 %vm39_vm1, %v727_v10 }
  0xca   :  { %909 = vmatpush.msrb.mxu2 %v1288_v22 }
  0xcc   :  { %910 = vmatpush.msrb.mxu2 %v1295_v23 }
  0xce   :  { %911 = vmatpush.msrb.mxu2 %v1304_v24 }
  0xd0   :  { %912 = vmatpush.msrb.mxu2 %v1313_v25 }
  0xd1   :  { %990 = vmatmul.msk.f32.gmra.mxu2 %vm39_vm1, %v728_v11 }
  0xd2   :  { %913 = vmatpush.msrb.mxu2 %v1322_v26  ;;  %v1483_v26 = vperm.slane %v1362_v30, 2 }
  0xd4   :  { %914 = vmatpush.msrb.mxu2 %v1331_v27 }
  0xd6   :  { %915 = vmatpush.msrb.mxu2 %v1340_v28 }
  0xd8   :  { %916 = vmatpush.msrb.mxu2 %v1349_v29 }
 0x115   :  { %v115_v13 = vpop.f32.mrf.mxu1 }
 0x116   :  { %v116_v15 = vadd.f32 %v115_v13, %v1478_v12 }
 0x118   :  { %v121_v16 = vmul.f32 0.5, %v116_v15 }
 0x11a   :  { %1016 = vtanh.f32 %v121_v16 }
 0x11d   :  { %v118_v17 = vpop.f32.mrf.mxu1 }
 0x11e   :  { %v119_v18 = vadd.f32 %v118_v17, %v1478_v12 }
 0x120   :  { %v1017_v22 = vpop.eup %1016  ;;  %v122_v23 = vmul.f32 0.5, %v119_v18 }
 0x121   :  { %v125_v25 = vmul.f32 0.5, %v1017_v22 }
 0x122   :  { %v240_v24 = vpop.f32.mrf.mxu3  ;;  %1018 = vtanh.f32 %v122_v23 }
 0x123   :  { %v241_v27 = vadd.f32 %v240_v24, %v1478_v12  ;;  %v127_v28 = vadd.f32 0.5, %v125_v25 }
 0x125   :  { %v246_v29 = vmul.f32 0.5, %v241_v27  ;;  %v130_v44 = vmul.f32 %v1483_v26, %v127_v28 }
 0x127   :  { %1020 = vtanh.f32 %v246_v29  ;;  %132 = vadd.xlane.f32.xlu0 %v130_v44 }
 0x128   :  { %v1019_v45 = vpop.eup %1018 }
 0x129   :  { %v126_v46 = vmul.f32 0.5, %v1019_v45 }
 0x12a   :  { %v243_v47 = vpop.f32.mrf.mxu3 }
 0x12b   :  { %v244_v48 = vadd.f32 %v243_v47, %v1478_v12  ;;  %v353_v49 = vpop.f32.mrf.mxu2  ;;  %v128_v50 = vadd.f32 0.5, %v126_v46 }
 0x12c   :  { %v354_v30 = vadd.f32 %v353_v49, %v1478_v12 }
 0x12d   :  { %v1021_v51 = vpop.eup %1020  ;;  %v247_v52 = vmul.f32 0.5, %v244_v48  ;;  %v131_v53 = vmul.f32 %v1483_v26, %v128_v50 }
 0x12e   :  { %v250_v54 = vmul.f32 0.5, %v1021_v51  ;;  %v359_v55 = vmul.f32 0.5, %v354_v30  ;;  %v840_v30 = vld [vmem:[%s1595_s0 + $0x70] sm:$0xff] }
 0x12f   :  { %1022 = vtanh.f32 %v247_v52  ;;  %134 = vadd.xlane.f32.xlu0 %v131_v53 }
 0x130   :  { %v252_v56 = vadd.f32 0.5, %v250_v54  ;;  %1024 = vtanh.f32 %v359_v55 }
 0x132   :  { %v254_v57 = vmul.f32 %v252_v56, %v1483_v26  ;;  %v532_v58 = vpop.f32.mrf.mxu3 }
 0x133   :  { %v533_v59 = vadd.f32 %v532_v58, %v1367_v31  ;;  %v356_v60 = vpop.f32.mrf.mxu2 }
 0x134   :  { %256 = vadd.xlane.f32.xlu2 %v254_v57  ;;  %v357_v62 = vadd.f32 %v356_v60, %v1478_v12 }
 0x135   :  { %v1023_v61 = vpop.eup %1022  ;;  %v538_v63 = vmul.f32 0.5, %v533_v59  ;;  %v466_v1 = vpop.f32.mrf.mxu1  ;;  %v841_v59 = vld [vmem:[%s1595_s0 + $0x78] sm:$0xff]  ;;  %s1118_s0 = smov [#allocation5]  }
 0x136   :  { %v251_v0 = vmul.f32 0.5, %v1023_v61  ;;  %v1025_v4 = vpop.eup %1024  ;;  %v360_v5 = vmul.f32 0.5, %v357_v62  ;;  %v467_v6 = vadd.f32 %v466_v1, %v1478_v12  ;;  %v139_v1 = vpop.permute.xlu1 %138  ;;  %s958_s21 = sshll.u32 %s1118_s0, 4  ;;  %s959_s21 = int_to_ptr.vmem [resolvable:$true] %s958_s21 }
 0x137   :  { %1026 = vtanh.f32 %v538_v63  ;;  %v363_v7 = vmul.f32 0.5, %v1025_v4  ;;  %v1519_v4 = vperm.slane %v139_v1, 3 }
 0x138   :  { %v253_v8 = vadd.f32 0.5, %v251_v0  ;;  %1028 = vtanh.f32 %v360_v5  ;;  %v472_v9 = vmul.f32 0.5, %v467_v6 }
 0x139   :  { %v365_v19 = vadd.f32 0.5, %v363_v7 }
 0x13a   :  { %v255_v14 = vmul.f32 %v253_v8, %v1483_v26  ;;  %v535_v20 = vpop.f32.mrf.mxu3  ;;  %1030 = vtanh.f32 %v472_v9 }
 0x13b   :  { %v536_v21 = vadd.f32 %v535_v20, %v1367_v31  ;;  %v367_v32 = vmul.f32 %v365_v19, %v1483_v26 }
 0x13c   :  { %258 = vadd.xlane.f32.xlu0 %v255_v14  ;;  %v645_v33 = vpop.f32.mrf.mxu2 }
 0x13d   :  { %v1027_v35 = vpop.eup %1026  ;;  %v646_v36 = vadd.f32 %v645_v33, %v1367_v31  ;;  %v539_v37 = vmul.f32 0.5, %v536_v21  ;;  %369 = vadd.xlane.f32.xlu1 %v367_v32  ;;  %v469_v38 = vpop.f32.mrf.mxu1 }
 0x13e   :  { %v542_v39 = vmul.f32 0.5, %v1027_v35  ;;  %v1029_v40 = vpop.eup %1028  ;;  %v470_v41 = vadd.f32 %v469_v38, %v1478_v12 }
 0x13f   :  { %v651_v42 = vmul.f32 0.5, %v646_v36  ;;  %1032 = vtanh.f32 %v539_v37  ;;  %v364_v43 = vmul.f32 0.5, %v1029_v40 }
 0x140   :  { %v544_v10 = vadd.f32 0.5, %v542_v39  ;;  %v1031_v11 = vpop.eup %1030  ;;  %v473_v13 = vmul.f32 0.5, %v470_v41 }
 0x141   :  { %1034 = vtanh.f32 %v651_v42  ;;  %v476_v15 = vmul.f32 0.5, %v1031_v11  ;;  %v366_v16 = vadd.f32 0.5, %v364_v43 }
 0x142   :  { %578 = vmatmul.f32.vlgmr.msrb.gmra.mxu0 %v544_v10  ;;  %1036 = vtanh.f32 %v473_v13 }
 0x143   :  { %v368_v17 = vmul.f32 %v366_v16, %v1483_v26  ;;  %v478_v18 = vadd.f32 0.5, %v476_v15 }
 0x144   :  { %v648_v22 = vpop.f32.mrf.mxu2 }
 0x145   :  { %v1033_v23 = vpop.eup %1032  ;;  %v649_v24 = vadd.f32 %v648_v22, %v1367_v31  ;;  %371 = vadd.xlane.f32.xlu2 %v368_v17  ;;  %v480_v2 = vmul.f32 %v478_v18, %v1483_v26 }
 0x146   :  { %v543_v25 = vmul.f32 0.5, %v1033_v23 }
 0x147   :  { %v1035_v27 = vpop.eup %1034  ;;  %v652_v28 = vmul.f32 0.5, %v649_v24  ;;  %482 = vadd.xlane.f32.xlu1 %v480_v2 }
 0x148   :  { %v655_v29 = vmul.f32 0.5, %v1035_v27  ;;  %v545_v3 = vadd.f32 0.5, %v543_v25  ;;  %v1037_v44 = vpop.eup %1036 }
 0x149   :  { %1038 = vtanh.f32 %v652_v28  ;;  %v477_v45 = vmul.f32 0.5, %v1037_v44 }
 0x14a   :  { %v657_v46 = vadd.f32 0.5, %v655_v29  ;;  %581 = vmatmul.f32.gmra.mxu0 %v545_v3 }
 0x14b   :  { %v479_v47 = vadd.f32 0.5, %v477_v45 }
 0x14c   :  { %691 = vmatmul.f32.vlgmr.msrb.gmra.mxu3 %v657_v46  ;;  %v758_v48 = vpop.f32.mrf.mxu2 }
 0x14d   :  { %v759_v49 = vadd.f32 %v758_v48, %v1367_v31  ;;  %v481_v50 = vmul.f32 %v479_v47, %v1483_v26 }
 0x14f   :  { %v1039_v51 = vpop.eup %1038  ;;  %v764_v52 = vmul.f32 0.5, %v759_v49  ;;  %484 = vadd.xlane.f32.xlu0 %v481_v50 }
 0x150   :  { %v656_v53 = vmul.f32 0.5, %v1039_v51 }
 0x151   :  { %1040 = vtanh.f32 %v764_v52 }
 0x152   :  { %v658_v54 = vadd.f32 0.5, %v656_v53  ;;  %992 = vmatmul.msk.f32.vlgmr.msra.gmra.mxu0 %vm39_vm1, %v840_v30 }
 0x154   :  { %v761_v55 = vpop.f32.mrf.mxu2  ;;  %694 = vmatmul.f32.gmra.mxu3 %v658_v54 }
 0x155   :  { %v762_v56 = vadd.f32 %v761_v55, %v1367_v31 }
 0x157   :  { %v1041_v57 = vpop.eup %1040  ;;  %v765_v58 = vmul.f32 0.5, %v762_v56 }
 0x158   :  { %v768_v60 = vmul.f32 0.5, %v1041_v57 }
 0x159   :  { %1042 = vtanh.f32 %v765_v58 }
 0x15a   :  { %v770_v61 = vadd.f32 0.5, %v768_v60  ;;  %993 = vmatmul.msk.f32.gmra.mxu0 %vm39_vm1, %v841_v59 }
 0x15c   :  { %804 = vmatmul.f32.vlgmr.msra.gmra.mxu1 %v770_v61 }
 0x15f   :  { %v1043_v62 = vpop.eup %1042 }
 0x160   :  { %v769_v63 = vmul.f32 0.5, %v1043_v62 }
 0x162   :  { %v771_v0 = vadd.f32 0.5, %v769_v63 }
 0x164   :  { %807 = vmatmul.f32.gmra.mxu1 %v771_v0 }
 0x19a   :  { %v133_v5 = vpop.xlane.xlu0 %132 }
 0x19b   :  { %v142_v6 = vadd.f32 %v1519_v4, %v133_v5 }
 0x19d   :  { %147 = vperm.xlu1 %997, %v142_v6  }
 0x1a2   :  { %v135_v7 = vpop.xlane.xlu0 %134 }
 0x1a3   :  { %v143_v8 = vadd.f32 %v1519_v4, %v135_v7 }
 0x1a5   :  { %150 = vperm.xlu2 %998, %v143_v8  }
 0x1a7   :  { %v257_v9 = vpop.xlane.xlu2 %256 }
 0x1a8   :  { %v260_v14 = vadd.f32 %v257_v9, %v1519_v4 }
 0x1aa   :  { %265 = vperm.xlu1 %997, %v260_v14  }
 0x1af   :  { %v259_v19 = vpop.xlane.xlu0 %258 }
 0x1b0   :  { %v261_v20 = vadd.f32 %v259_v19, %v1519_v4  ;;  %v370_v21 = vpop.xlane.xlu1 %369 }
 0x1b1   :  { %v373_v32 = vadd.f32 %v370_v21, %v1519_v4 }
 0x1b2   :  { %268 = vperm.xlu0 %999, %v261_v20  }
 0x1b3   :  { %378 = vperm.xlu2 %998, %v373_v32   ;;  %v152_v32 = vlaneseq }
 0x1b8   :  { %v372_v33 = vpop.xlane.xlu2 %371 }
 0x1b9   :  { %v374_v34 = vadd.f32 %v372_v33, %v1519_v4  ;;  %v1543_v33 = vand.u32 127, %v152_v32 }
 0x1ba   :  { %v483_v35 = vpop.xlane.xlu1 %482 }
 0x1bb   :  { %v486_v36 = vadd.f32 %v483_v35, %v1519_v4  ;;  %381 = vperm.xlu0 %999, %v374_v34   ;;  %v1546_v34 = vadd.s32 4294967288, %v1543_v33 }
 0x1bd   :  { %491 = vperm.xlu1 %997, %v486_v36  }
 0x1bf   :  { %v579_v37 = vpop.f32.mrf.mxu0 }
 0x1c0   :  { %v580_v16 = vadd.f32 %v579_v37, %v1478_v12 }
 0x1c2   :  { %v485_v38 = vpop.xlane.xlu0 %484  ;;  %v585_v18 = vmul.f32 0.5, %v580_v16 }
 0x1c3   :  { %v487_v39 = vadd.f32 %v485_v38, %v1519_v4 }
 0x1c5   :  { %494 = vperm.xlu2 %998, %v487_v39  }
 0x1c7   :  { %v582_v40 = vpop.f32.mrf.mxu0 }
 0x1c8   :  { %v583_v41 = vadd.f32 %v582_v40, %v1478_v12 }
 0x1ca   :  { %v586_v43 = vmul.f32 0.5, %v583_v41 }
 0x1cc   :  { %1044 = vtanh.f32 %v586_v43 }
 0x1cf   :  { %v692_v42 = vpop.f32.mrf.mxu3  ;;  %v871_v11 = vpop.f32.mrf.mxu0 }
 0x1d0   :  { %v693_v10 = vadd.f32 %v692_v42, %v1478_v12  ;;  %v872_v13 = vadd.f32 %v871_v11, %v1367_v31 }
 0x1d2   :  { %v698_v15 = vmul.f32 0.5, %v693_v10  ;;  %v877_v17 = vmul.f32 0.5, %v872_v13  ;;  %v1045_v2 = vpop.eup %1044 }
 0x1d3   :  { %v590_v47 = vmul.f32 0.5, %v1045_v2 }
 0x1d4   :  { %1046 = vtanh.f32 %v698_v15 }
 0x1d5   :  { %1048 = vtanh.f32 %v877_v17  ;;  %v592_v52 = vadd.f32 0.5, %v590_v47 }
 0x1d6   :  { %1050 = vtanh.f32 %v585_v18 }
 0x1d7   :  { %v695_v22 = vpop.f32.mrf.mxu3  ;;  %v874_v24 = vpop.f32.mrf.mxu0  ;;  %v594_v59 = vmul.f32 %v592_v52, %v1483_v26 }
 0x1d8   :  { %v696_v23 = vadd.f32 %v695_v22, %v1478_v12  ;;  %v875_v27 = vadd.f32 %v874_v24, %v1367_v31 }
 0x1d9   :  { %v805_v25 = vpop.f32.mrf.mxu1 }
 0x1da   :  { %v1047_v28 = vpop.eup %1046  ;;  %v699_v29 = vmul.f32 0.5, %v696_v23  ;;  %v806_v3 = vadd.f32 %v805_v25, %v1478_v12  ;;  %v878_v46 = vmul.f32 0.5, %v875_v27 }
 0x1db   :  { %v1049_v44 = vpop.eup %1048  ;;  %v702_v45 = vmul.f32 0.5, %v1047_v28 }
 0x1dc   :  { %1052 = vtanh.f32 %v699_v29  ;;  %v881_v48 = vmul.f32 0.5, %v1049_v44  ;;  %v811_v49 = vmul.f32 0.5, %v806_v3  ;;  %v1051_v30 = vpop.eup %1050 }
 0x1dd   :  { %1054 = vtanh.f32 %v878_v46  ;;  %v704_v50 = vadd.f32 0.5, %v702_v45  ;;  %v589_v61 = vmul.f32 0.5, %v1051_v30 }
 0x1de   :  { %v883_v51 = vadd.f32 0.5, %v881_v48  ;;  %1056 = vtanh.f32 %v811_v49 }
 0x1df   :  { %v706_v55 = vmul.f32 %v704_v50, %v1483_v26  ;;  %v591_v1 = vadd.f32 0.5, %v589_v61 }
 0x1e0   :  { %917 = vmatmul.f32.vlgmr.msrb.gmra.mxu2 %v883_v51 }
 0x1e1   :  { %v808_v53 = vpop.f32.mrf.mxu1  ;;  %v593_v9 = vmul.f32 %v591_v1, %v1483_v26 }
 0x1e2   :  { %v1053_v31 = vpop.eup %1052  ;;  %v809_v54 = vadd.f32 %v808_v53, %v1478_v12 }
 0x1e3   :  { %v1055_v56 = vpop.eup %1054  ;;  %v703_v57 = vmul.f32 0.5, %v1053_v31 }
 0x1e4   :  { %v812_v58 = vmul.f32 0.5, %v809_v54  ;;  %v882_v60 = vmul.f32 0.5, %v1055_v56  ;;  %v1057_v63 = vpop.eup %1056 }
 0x1e5   :  { %708 = vadd.xlane.f32.xlu0 %v706_v55  ;;  %v705_v0 = vadd.f32 0.5, %v703_v57  ;;  %v815_v5 = vmul.f32 0.5, %v1057_v63 }
 0x1e6   :  { %1058 = vtanh.f32 %v812_v58  ;;  %v884_v62 = vadd.f32 0.5, %v882_v60 }
 0x1e7   :  { %597 = vadd.xlane.f32.xlu1 %v594_v59  ;;  %v707_v7 = vmul.f32 %v705_v0, %v1483_v26  ;;  %v817_v14 = vadd.f32 0.5, %v815_v5 }
 0x1e8   :  { %920 = vmatmul.f32.gmra.mxu2 %v884_v62 }
 0x1e9   :  { %v819_v20 = vmul.f32 %v817_v14, %v1483_v26 }
 0x1ec   :  { %v1059_v6 = vpop.eup %1058 }
 0x1ed   :  { %v816_v8 = vmul.f32 0.5, %v1059_v6 }
 0x1ee   :  { %595 = vadd.xlane.f32.xlu2 %v593_v9 }
 0x1ef   :  { %710 = vadd.xlane.f32.xlu1 %v707_v7  ;;  %v818_v19 = vadd.f32 0.5, %v816_v8 }
 0x1f1   :  { %v820_v21 = vmul.f32 %v818_v19, %v1483_v26 }
 0x1f6   :  { %821 = vadd.xlane.f32.xlu2 %v819_v20 }
 0x1f7   :  { %823 = vadd.xlane.f32.xlu1 %v820_v21 }
 0x1ff   :  { %v151_v35 = vpop.permute.xlu2 %150 }
 0x200   :  { %v156_v37 = vperm.slane %v151_v35, %v1546_v34 }
 0x20d   :  { %v379_v10 = vpop.permute.xlu2 %378 }
 0x20e   :  { %v383_v16 = vperm.slane %v379_v10, %v1543_v33 }
 0x20f   :  { %v148_v36 = vpop.permute.xlu1 %147 }
 0x210   :  { %v154_v38 = vperm.slane %v148_v36, %v1543_v33 }
 0x212   :  { %v158_v39 = vsel %vm157_vm2, %v156_v37, %v154_v38 }
 0x213   :  { %161 = vst.msk [vmem:[#allocation5] sm:$0x1] %vm160_vm3, %v158_v39 }
 0x21c   :  { %v266_v40 = vpop.permute.xlu1 %265 }
 0x21d   :  { %v270_v42 = vperm.slane %v266_v40, %v1543_v33 }
 0x21f   :  { %v495_v13 = vpop.permute.xlu2 %494 }
 0x220   :  { %v497_v22 = vperm.slane %v495_v13, %v1546_v34 }
 0x224   :  { %v269_v41 = vpop.permute.xlu0 %268 }
 0x225   :  { %v271_v43 = vperm.slane %v269_v41, %v1546_v34 }
 0x227   :  { %v272_v11 = vsel %vm157_vm2, %v271_v43, %v270_v42 }
 0x228   :  { %274 = vst.msk [vmem:[#allocation5 + $0x1] sm:$0x1] %vm160_vm3, %v272_v11 }
 0x22d   :  { %v382_v15 = vpop.permute.xlu0 %381 }
 0x22e   :  { %v384_v17 = vperm.slane %v382_v15, %v1546_v34 }
 0x22f   :  { %v492_v18 = vpop.permute.xlu1 %491 }
 0x230   :  { %v385_v23 = vsel %vm157_vm2, %v384_v17, %v383_v16  ;;  %v496_v24 = vperm.slane %v492_v18, %v1543_v33 }
 0x231   :  { %387 = vst.msk [vmem:[#allocation5 + $0x2] sm:$0x1] %vm160_vm3, %v385_v23 }
 0x232   :  { %v498_v2 = vsel %vm157_vm2, %v497_v22, %v496_v24 }
 0x233   :  { %500 = vst.msk [vmem:[#allocation5 + $0x3] sm:$0x1] %vm160_vm3, %v498_v2 }
 0x258   :  { %v709_v25 = vpop.xlane.xlu0 %708 }
 0x259   :  { %v712_v27 = vadd.f32 %v709_v25, %v1519_v4 }
 0x25a   :  { %v598_v28 = vpop.xlane.xlu1 %597 }
 0x25b   :  { %v600_v29 = vadd.f32 %v598_v28, %v1519_v4  ;;  %717 = vperm.xlu1 %997, %v712_v27  }
 0x25d   :  { %607 = vperm.xlu2 %998, %v600_v29  }
 0x261   :  { %v596_v3 = vpop.xlane.xlu2 %595 }
 0x262   :  { %v599_v44 = vadd.f32 %v596_v3, %v1519_v4  ;;  %v711_v45 = vpop.xlane.xlu1 %710 }
 0x263   :  { %v713_v47 = vadd.f32 %v711_v45, %v1519_v4  ;;  %v918_v49 = vpop.f32.mrf.mxu2 }
 0x264   :  { %604 = vperm.xlu0 %999, %v599_v44   ;;  %v919_v50 = vadd.f32 %v918_v49, %v1478_v12 }
 0x266   :  { %v924_v51 = vmul.f32 0.5, %v919_v50 }
 0x268   :  { %1060 = vtanh.f32 %v924_v51 }
 0x269   :  { %v822_v46 = vpop.xlane.xlu2 %821 }
 0x26a   :  { %v825_v48 = vadd.f32 %v822_v46, %v1519_v4  ;;  %v824_v61 = vpop.xlane.xlu1 %823 }
 0x26b   :  { %v921_v52 = vpop.f32.mrf.mxu2  ;;  %v826_v62 = vadd.f32 %v824_v61, %v1519_v4 }
 0x26c   :  { %720 = vperm.xlu0 %999, %v713_v47   ;;  %830 = vperm.xlu2 %998, %v825_v48   ;;  %v922_v30 = vadd.f32 %v921_v52, %v1478_v12 }
 0x26e   :  { %v925_v53 = vmul.f32 0.5, %v922_v30  ;;  %v1061_v31 = vpop.eup %1060 }
 0x26f   :  { %v928_v54 = vmul.f32 0.5, %v1061_v31 }
 0x270   :  { %1062 = vtanh.f32 %v925_v53 }
 0x271   :  { %v930_v55 = vadd.f32 0.5, %v928_v54 }
 0x273   :  { %v932_v58 = vmul.f32 %v930_v55, %v1483_v26 }
 0x276   :  { %v1063_v56 = vpop.eup %1062 }
 0x277   :  { %v929_v57 = vmul.f32 0.5, %v1063_v56 }
 0x279   :  { %v931_v59 = vadd.f32 0.5, %v929_v57 }
 0x27b   :  { %v933_v60 = vmul.f32 %v931_v59, %v1483_v26 }
 0x296   :  { %934 = vadd.xlane.f32.xlu0 %v932_v58 }
 0x29e   :  { %936 = vadd.xlane.f32.xlu0 %v933_v60 }
 0x2b2   :  { %833 = vperm.xlu0 %999, %v826_v62  }
 0x2b7   :  { %v608_v63 = vpop.permute.xlu2 %607 }
 0x2b8   :  { %v610_v0 = vperm.slane %v608_v63, %v1546_v34 }
 0x2c6   :  { %v831_v32 = vpop.permute.xlu2 %830 }
 0x2c7   :  { %v835_v36 = vperm.slane %v831_v32, %v1543_v33 }
 0x2cd   :  { %v718_v6 = vpop.permute.xlu1 %717 }
 0x2ce   :  { %v722_v8 = vperm.slane %v718_v6, %v1543_v33 }
 0x2d6   :  { %v605_v12 = vpop.permute.xlu0 %604 }
 0x2d7   :  { %v609_v1 = vperm.slane %v605_v12, %v1543_v33 }
 0x2d9   :  { %v611_v5 = vsel %vm157_vm2, %v610_v0, %v609_v1 }
 0x2da   :  { %613 = vst.msk [vmem:[#allocation5 + $0x4] sm:$0x1] %vm160_vm3, %v611_v5 }
 0x2de   :  { %v721_v7 = vpop.permute.xlu0 %720 }
 0x2df   :  { %v723_v26 = vperm.slane %v721_v7, %v1546_v34 }
 0x2e1   :  { %v724_v9 = vsel %vm157_vm2, %v723_v26, %v722_v8 }
 0x2e2   :  { %726 = vst.msk [vmem:[#allocation5 + $0x5] sm:$0x1] %vm160_vm3, %v724_v9 }
 0x309   :  { %v935_v14 = vpop.xlane.xlu0 %934 }
 0x30a   :  { %v938_v19 = vadd.f32 %v935_v14, %v1519_v4 }
 0x30c   :  { %943 = vperm.xlu1 %997, %v938_v19  }
 0x311   :  { %v937_v20 = vpop.xlane.xlu0 %936 }
 0x312   :  { %v939_v21 = vadd.f32 %v937_v20, %v1519_v4 }
 0x314   :  { %946 = vperm.xlu2 %998, %v939_v21  }
 0x324   :  { %v834_v35 = vpop.permute.xlu0 %833 }
 0x325   :  { %v836_v37 = vperm.slane %v834_v35, %v1546_v34 }
 0x327   :  { %v837_v38 = vsel %vm157_vm2, %v836_v37, %v835_v36 }
 0x328   :  { %839 = vst.msk [vmem:[#allocation5 + $0x6] sm:$0x1] %vm160_vm3, %v837_v38 }
 0x36e   :  { %v947_v39 = vpop.permute.xlu2 %946 }
 0x36f   :  { %v949_v4 = vperm.slane %v947_v39, %v1546_v34 }
 0x37e   :  { %v944_v40 = vpop.permute.xlu1 %943 }
 0x37f   :  { %v948_v41 = vperm.slane %v944_v40, %v1543_v33 }
 0x381   :  { %v950_v42 = vsel %vm157_vm2, %v949_v4, %v948_v41 }
 0x382   :  { %952 = vst.msk [vmem:[#allocation5 + $0x7] sm:$0x1] %vm160_vm3, %v950_v42 }
 0x383   :  { %963 = dma.vmem_to_hbm [thread:$0]  %s959_s21, 128, %s961_s24, [#allocation4]  }
 0x384   :  { %1114 = dma.done.wait [#allocation4], 128  }
 0x385   :  { %1115 = vsyncadd [#allocation4], 4294967168 }
 0x386   :  { %968 = vsyncpa [#allocation3], 1 }
 0x387   :  { %969 = vsyncpa [#allocation4], 1 }

</bundles_post_ra>
